<compile_context>
chip_gen: v6e
topology: v6e:2x2x1
jax: 0.10.0
libtpu: 0.0.40
codegen_flags: <defaults>
</compile_context>

<pallas_src>
import math
import functools

import jax
import jax.numpy as jnp
from jax.experimental import pallas as pl
from jax.experimental.pallas import tpu as pltpu


def _round_up(x, m):
    return ((x + m - 1) // m) * m


def _gcn_linear_kernel(x_ref, w_ref, b_ref, o_ref, acc_ref):
    # x_ref: (tm, tk), w_ref: (tk, tn), b_ref: (1, tn),
    # o_ref: (tm, tn), acc_ref: (tm, tn) f32 scratch.
    k = pl.program_id(2)

    @pl.when(k == 0)
    def _():
        acc_ref[...] = jnp.zeros_like(acc_ref)

    acc_ref[...] += jnp.dot(
        x_ref[...], w_ref[...], preferred_element_type=jnp.float32
    )

    @pl.when(k == pl.num_programs(2) - 1)
    def _():
        # Bias broadcast (1, tn) over rows; f32 add, then cast to output dtype.
        o_ref[...] = (acc_ref[...] + b_ref[...]).astype(o_ref.dtype)


@functools.partial(jax.jit, static_argnames=("tm_cap", "tn_cap", "tk_cap"))
def gcn_linear(x, weight, bias=None, *, tm_cap=512, tn_cap=256, tk_cap=512):
    """output = x @ weight (+ bias), computed in a Pallas TPU kernel."""
    M, K = x.shape
    Kw, N = weight.shape
    assert K == Kw, "input / weight channel mismatch"

    if bias is None:
        bias = jnp.zeros((N,), dtype=x.dtype)

    # --- tile sizes -------------------------------------------------------
    # M tile: multiple of 8 (f32 sublane), as large as useful (cap 512).
    tm = min(tm_cap, _round_up(M, 8))
    # N / K tiles: multiples of 128 (lane / MXU native), caps at 256 / 512.
    tn = min(tn_cap, _round_up(N, 128))
    tk = min(tk_cap, _round_up(K, 128))

    # --- pad operands so every tile is full (lane/sublane dense) ----------
    Mp = _round_up(M, tm)
    Np = _round_up(N, tn)
    Kp = _round_up(K, tk)

    if (Mp, Kp) != (M, K):
        x = jnp.pad(x, ((0, Mp - M), (0, Kp - K)))
    if (Kp, Np) != (K, N):
        weight = jnp.pad(weight, ((0, Kp - K), (0, Np - N)))
    if Np != N:
        bias = jnp.pad(bias, (0, Np - N))
    bias2d = bias.reshape(1, Np)

    grid = (Mp // tm, Np // tn, Kp // tk)

    # Explicit VMEM budget: double-buffered inputs/outputs + f32 accumulator,
    # with generous headroom. Tile caps keep this well under 32 MiB.
    tile_bytes = 4 * (tm * tk + tk * tn + tn + tm * tn)
    vmem_limit = min(128 * 1024 * 1024, max(16 * 1024 * 1024, 4 * tile_bytes))

    grid_spec = pltpu.PrefetchScalarGridSpec(
        num_scalar_prefetch=0,
        grid=grid,
        in_specs=[
            pl.BlockSpec((tm, tk), lambda i, j, k: (i, k)),   # input tile
            pl.BlockSpec((tk, tn), lambda i, j, k: (k, j)),   # weight tile
            pl.BlockSpec((1, tn), lambda i, j, k: (0, j)),    # bias slice
        ],
        out_specs=pl.BlockSpec((tm, tn), lambda i, j, k: (i, j)),
        scratch_shapes=[pltpu.VMEM((tm, tn), jnp.float32)],
    )

    out_padded = pl.pallas_call(
        _gcn_linear_kernel,
        out_shape=jax.ShapeDtypeStruct((Mp, Np), x.dtype),
        grid_spec=grid_spec,
        compiler_params=pltpu.CompilerParams(
            dimension_semantics=("parallel", "parallel", "arbitrary"),
            vmem_limit_bytes=vmem_limit,
        ),
    )(x, weight, bias2d)

    if (Mp, Np) != (M, N):
        out_padded = out_padded[:M, :N]
    return out_padded


if __name__ == "__main__":
    # Small, deterministic synthetic problem (matches GCNLinear forward).
    num_nodes = 64
    in_channels = 32
    out_channels = 16

    key = jax.random.PRNGKey(0)
    k_x, k_w, k_b = jax.random.split(key, 3)

    # Matches reset_parameters(): stdv = 1 / sqrt(weight.T.size(1)) = 1/sqrt(in_channels)
    stdv = 1.0 / math.sqrt(in_channels)
    x = jax.random.normal(k_x, (num_nodes, in_channels), dtype=jnp.float32)
    weight = jax.random.uniform(
        k_w, (in_channels, out_channels), dtype=jnp.float32, minval=-stdv, maxval=stdv
    )
    bias = jax.random.uniform(
        k_b, (out_channels,), dtype=jnp.float32, minval=-stdv, maxval=stdv
    )

    out = gcn_linear(x, weight, bias)
    out = jax.block_until_ready(out)

    # Reference check against plain JAX.
    ref = x @ weight + bias
    assert out.shape == (num_nodes, out_channels)
    assert jnp.allclose(out, ref, atol=1e-5, rtol=1e-5)

    # Also exercise the no-bias path and a non-divisible M with larger channels.
    x2 = jax.random.normal(k_x, (300, 200), dtype=jnp.float32)
    w2 = jax.random.normal(k_w, (200, 384), dtype=jnp.float32) * 0.05
    out2 = jax.block_until_ready(gcn_linear(x2, w2, None))
    ref2 = x2 @ w2
    assert out2.shape == (300, 384)
    assert jnp.allclose(out2, ref2, atol=1e-4, rtol=1e-4)

    print("KERNEL_OK")
</pallas_src>

<mosaic_0001>
module attributes {stable_mosaic.version = 11 : i64} {
  func.func @_gcn_linear_kernel(%arg0: i32, %arg1: i32, %arg2: i32, %arg3: memref<64x128xf32, #tpu.memory_space<vmem>>, %arg4: memref<128x128xf32, #tpu.memory_space<vmem>>, %arg5: memref<1x128xf32, #tpu.memory_space<vmem>>, %arg6: memref<64x128xf32, #tpu.memory_space<vmem>>, %arg7: memref<64x128xf32, #tpu.memory_space<vmem>>) attributes {dimension_semantics = [#tpu.dimension_semantics<parallel>, #tpu.dimension_semantics<parallel>, #tpu.dimension_semantics<arbitrary>], iteration_bounds = array<i64: 1, 1, 1>, scalar_prefetch = 0 : i64, scratch_operands = 1 : i64, tpu.core_type = #tpu.core_type<tc>, window_params = [{transform_indices = @transform_0, window_bounds = array<i64: 64, 128>}, {transform_indices = @transform_1, window_bounds = array<i64: 128, 128>}, {transform_indices = @transform_2, window_bounds = array<i64: 1, 128>}, {transform_indices = @transform_3, window_bounds = array<i64: 64, 128>}]} {
    %c0_i32 = arith.constant 0 : i32
    %0 = arith.cmpi eq, %arg2, %c0_i32 : i32
    %1 = arith.extui %0 : i1 to i32
    %c0_i32_0 = arith.constant 0 : i32
    %2 = arith.cmpi ne, %1, %c0_i32_0 : i32
    scf.if %2 {
      %cst_10 = arith.constant 0.000000e+00 : f32
      %12 = vector.broadcast %cst_10 : f32 to vector<64x128xf32>
      %c0_11 = arith.constant 0 : index
      %c0_12 = arith.constant 0 : index
      %13 = vector.load %arg7[%c0_11, %c0_12] : memref<64x128xf32, #tpu.memory_space<vmem>>, vector<64x128xf32>
      tpu.vector_store %arg7[%c0_11, %c0_12], %12 {strides = array<i32>} : memref<64x128xf32, #tpu.memory_space<vmem>>, vector<64x128xf32>,
    } else {
    }
    %c0 = arith.constant 0 : index
    %c0_1 = arith.constant 0 : index
    %3 = vector.load %arg7[%c0, %c0_1] : memref<64x128xf32, #tpu.memory_space<vmem>>, vector<64x128xf32>
    %c0_2 = arith.constant 0 : index
    %c0_3 = arith.constant 0 : index
    %4 = vector.load %arg3[%c0_2, %c0_3] : memref<64x128xf32, #tpu.memory_space<vmem>>, vector<64x128xf32>
    %c0_4 = arith.constant 0 : index
    %c0_5 = arith.constant 0 : index
    %5 = vector.load %arg4[%c0_4, %c0_5] : memref<128x128xf32, #tpu.memory_space<vmem>>, vector<128x128xf32>
    %cst = arith.constant dense<0.000000e+00> : vector<64x128xf32>
    %6 = tpu.matmul %4, %5, %cst {dimension_numbers = #tpu.dot_dimension_numbers<[1], [0], [0], [1], [0, 0, 1, 1], [], []>} : vector<64x128xf32>, vector<128x128xf32>, vector<64x128xf32> -> vector<64x128xf32>
    %7 = arith.addf %3, %6 : vector<64x128xf32>
    %c0_6 = arith.constant 0 : index
    %c0_7 = arith.constant 0 : index
    %8 = vector.load %arg7[%c0_6, %c0_7] : memref<64x128xf32, #tpu.memory_space<vmem>>, vector<64x128xf32>
    tpu.vector_store %arg7[%c0_6, %c0_7], %7 {strides = array<i32>} : memref<64x128xf32, #tpu.memory_space<vmem>>, vector<64x128xf32>,
    %c0_i32_8 = arith.constant 0 : i32
    %9 = arith.cmpi eq, %arg2, %c0_i32_8 : i32
    %10 = arith.extui %9 : i1 to i32
    %c0_i32_9 = arith.constant 0 : i32
    %11 = arith.cmpi ne, %10, %c0_i32_9 : i32
    scf.if %11 {
      %c0_10 = arith.constant 0 : index
      %c0_11 = arith.constant 0 : index
      %12 = vector.load %arg7[%c0_10, %c0_11] : memref<64x128xf32, #tpu.memory_space<vmem>>, vector<64x128xf32>
      %c0_12 = arith.constant 0 : index
      %c0_13 = arith.constant 0 : index
      %13 = vector.load %arg5[%c0_12, %c0_13] : memref<1x128xf32, #tpu.memory_space<vmem>>, vector<1x128xf32>
      %14 = vector.broadcast %13 : vector<1x128xf32> to vector<64x128xf32>
      %15 = arith.addf %12, %14 : vector<64x128xf32>
      %c0_14 = arith.constant 0 : index
      %c0_15 = arith.constant 0 : index
      %16 = vector.load %arg6[%c0_14, %c0_15] : memref<64x128xf32, #tpu.memory_space<vmem>>, vector<64x128xf32>
      tpu.vector_store %arg6[%c0_14, %c0_15], %15 {strides = array<i32>} : memref<64x128xf32, #tpu.memory_space<vmem>>, vector<64x128xf32>,
    } else {
    }
    return
  }
  func.func @transform_0(%arg0: i32, %arg1: i32, %arg2: i32) -> (i32, i32) {
    %c0_i32 = arith.constant 0 : i32
    return %arg0, %arg2 : i32, i32
  }
  func.func @transform_1(%arg0: i32, %arg1: i32, %arg2: i32) -> (i32, i32) {
    %c0_i32 = arith.constant 0 : i32
    return %arg2, %arg1 : i32, i32
  }
  func.func @transform_2(%arg0: i32, %arg1: i32, %arg2: i32) -> (i32, i32) {
    %c0_i32 = arith.constant 0 : i32
    %c0_i32_0 = arith.constant 0 : i32
    return %c0_i32, %arg1 : i32, i32
  }
  func.func @transform_3(%arg0: i32, %arg1: i32, %arg2: i32) -> (i32, i32) {
    %c0_i32 = arith.constant 0 : i32
    return %arg0, %arg1 : i32, i32
  }
}

</mosaic_0001>

<bundles_post_ra>
// kernel: gcn_linear.1
= control target key start
LH: loop header
LB: loop body
LE: loop exit
PB: predicated region body
PF: predicated region fallthrough
CT: control target
= control target key end

     0   :  { %s437_s1 = inlined_call_operand.vmem [shape: f32[128,128], index: 1, kind: input, shape index: {}]   ;;  %s438_s0 = inlined_call_operand.vmem [shape: f32[64,128], index: 0, kind: input, shape index: {}]   ;;  %s439_s2 = inlined_call_operand.vmem [shape: f32[1,128], index: 2, kind: input, shape index: {}]   ;;  %s440_s3 = inlined_call_operand.vmem [shape: f32[64,128], index: 3, kind: output, shape index: {}]  }
   0x1   :  { %v57_v0 = vld [vmem:[%s437_s1 + $0x78] sm:$0xff]  ;;  %v56_v1 = vld [vmem:[%s437_s1 + $0x70] sm:$0xff]  ;;  %v55_v2 = vld [vmem:[%s437_s1 + $0x68] sm:$0xff] }
   0x2   :  { %242 = vmatprep.subr.mxu0 %v57_v0  ;;  %286 = vmatprep.subr.mxu1 %v57_v0  ;;  %v54_v3 = vld [vmem:[%s437_s1 + $0x60] sm:$0xff]  ;;  %v53_v4 = vld [vmem:[%s437_s1 + $0x58] sm:$0xff]  ;;  %v52_v5 = vld [vmem:[%s437_s1 + $0x50] sm:$0xff] }
   0x3   :  { %243 = vmatpush3.msra.mxu0 %v57_v0  ;;  %302 = vmatpush3.msra.mxu1 %v57_v0  ;;  %v51_v6 = vld [vmem:[%s437_s1 + $0x48] sm:$0xff]  ;;  %v50_v7 = vld [vmem:[%s437_s1 + $0x40] sm:$0xff]  ;;  %v49_v8 = vld [vmem:[%s437_s1 + $0x38] sm:$0xff] }
   0x4   :  { %244 = vmatprep.subr.mxu0 %v56_v1  ;;  %287 = vmatprep.subr.mxu1 %v56_v1  ;;  %v48_v9 = vld [vmem:[%s437_s1 + $0x30] sm:$0xff]  ;;  %v47_v10 = vld [vmem:[%s437_s1 + $0x28] sm:$0xff]  ;;  %v46_v11 = vld [vmem:[%s437_s1 + $0x20] sm:$0xff] }
   0x5   :  { %245 = vmatpush3.msra.mxu0 %v56_v1  ;;  %303 = vmatpush3.msra.mxu1 %v56_v1  ;;  %v45_v12 = vld [vmem:[%s437_s1 + $0x18] sm:$0xff]  ;;  %v44_v13 = vld [vmem:[%s437_s1 + $0x10] sm:$0xff]  ;;  %v43_v14 = vld [vmem:[%s437_s1 + $0x8] sm:$0xff] }
   0x6   :  { %246 = vmatprep.subr.mxu0 %v55_v2  ;;  %288 = vmatprep.subr.mxu1 %v55_v2  ;;  %v42_v15 = vld [vmem:[%s437_s1] sm:$0xff]  ;;  %v35_v18 = vld [vmem:[%s438_s0 + $0x8] sm:$0xff]  ;;  %v36_v20 = vld [vmem:[%s438_s0 + $0x10] sm:$0xff] }
   0x7   :  { %247 = vmatpush3.msra.mxu0 %v55_v2  ;;  %304 = vmatpush3.msra.mxu1 %v55_v2  ;;  %v34_v16 = vld [vmem:[%s438_s0] sm:$0xff]  ;;  %v39_v19 = vld [vmem:[%s438_s0 + $0x28] sm:$0xff]  ;;  %v40_v21 = vld [vmem:[%s438_s0 + $0x30] sm:$0xff] }
   0x8   :  { %248 = vmatprep.subr.mxu0 %v54_v3  ;;  %289 = vmatprep.subr.mxu1 %v54_v3  ;;  %v38_v17 = vld [vmem:[%s438_s0 + $0x20] sm:$0xff]  ;;  %v37_v22 = vld [vmem:[%s438_s0 + $0x18] sm:$0xff] }
   0x9   :  { %249 = vmatpush3.msra.mxu0 %v54_v3  ;;  %305 = vmatpush3.msra.mxu1 %v54_v3  ;;  %v41_v23 = vld [vmem:[%s438_s0 + $0x38] sm:$0xff]  ;;  %v217_v24 = vld [vmem:[%s439_s2] ss:$0 sm:$0xff] }
   0xa   :  { %250 = vmatprep.subr.mxu0 %v53_v4  ;;  %290 = vmatprep.subr.mxu1 %v53_v4 }
   0xb   :  { %251 = vmatpush3.msra.mxu0 %v53_v4  ;;  %306 = vmatpush3.msra.mxu1 %v53_v4 }
   0xc   :  { %252 = vmatprep.subr.mxu0 %v52_v5  ;;  %291 = vmatprep.subr.mxu1 %v52_v5 }
   0xd   :  { %253 = vmatpush3.msra.mxu0 %v52_v5  ;;  %307 = vmatpush3.msra.mxu1 %v52_v5 }
   0xe   :  { %254 = vmatprep.subr.mxu0 %v51_v6  ;;  %292 = vmatprep.subr.mxu1 %v51_v6 }
   0xf   :  { %255 = vmatpush3.msra.mxu0 %v51_v6  ;;  %308 = vmatpush3.msra.mxu1 %v51_v6 }
  0x10   :  { %256 = vmatprep.subr.mxu0 %v50_v7  ;;  %293 = vmatprep.subr.mxu1 %v50_v7 }
  0x11   :  { %257 = vmatpush3.msra.mxu0 %v50_v7  ;;  %309 = vmatpush3.msra.mxu1 %v50_v7 }
  0x12   :  { %258 = vmatprep.subr.mxu0 %v49_v8  ;;  %294 = vmatprep.subr.mxu1 %v49_v8 }
  0x13   :  { %259 = vmatpush3.msra.mxu0 %v49_v8  ;;  %310 = vmatpush3.msra.mxu1 %v49_v8 }
  0x14   :  { %260 = vmatprep.subr.mxu0 %v48_v9  ;;  %295 = vmatprep.subr.mxu1 %v48_v9 }
  0x15   :  { %261 = vmatpush3.msra.mxu0 %v48_v9  ;;  %311 = vmatpush3.msra.mxu1 %v48_v9 }
  0x16   :  { %262 = vmatprep.subr.mxu0 %v47_v10  ;;  %296 = vmatprep.subr.mxu1 %v47_v10 }
  0x17   :  { %263 = vmatpush3.msra.mxu0 %v47_v10  ;;  %312 = vmatpush3.msra.mxu1 %v47_v10 }
  0x18   :  { %264 = vmatprep.subr.mxu0 %v46_v11  ;;  %297 = vmatprep.subr.mxu1 %v46_v11 }
  0x19   :  { %265 = vmatpush3.msra.mxu0 %v46_v11  ;;  %313 = vmatpush3.msra.mxu1 %v46_v11 }
  0x1a   :  { %266 = vmatprep.subr.mxu0 %v45_v12  ;;  %298 = vmatprep.subr.mxu1 %v45_v12 }
  0x1b   :  { %267 = vmatpush3.msra.mxu0 %v45_v12  ;;  %314 = vmatpush3.msra.mxu1 %v45_v12 }
  0x1c   :  { %268 = vmatprep.subr.mxu0 %v44_v13  ;;  %299 = vmatprep.subr.mxu1 %v44_v13 }
  0x1d   :  { %269 = vmatpush3.msra.mxu0 %v44_v13  ;;  %315 = vmatpush3.msra.mxu1 %v44_v13 }
  0x1e   :  { %270 = vmatprep.subr.mxu0 %v43_v14  ;;  %300 = vmatprep.subr.mxu1 %v43_v14 }
  0x1f   :  { %271 = vmatpush3.msra.mxu0 %v43_v14  ;;  %316 = vmatpush3.msra.mxu1 %v43_v14 }
  0x20   :  { %272 = vmatprep.subr.mxu0 %v42_v15  ;;  %301 = vmatprep.subr.mxu1 %v42_v15 }
  0x21   :  { %273 = vmatpush3.msra.mxu0 %v42_v15  ;;  %317 = vmatpush3.msra.mxu1 %v42_v15 }
  0x22   :  { %274 = vmatprep.mubr.f32.mxu0 %v34_v16  ;;  %280 = vmatprep.mubr.f32.mxu1 %v38_v17 }
  0x23   :  { %275 = vmatmul.mubr.f32.vlgmr.msra.gmra.mxu0 %v35_v18  ;;  %281 = vmatmul.mubr.f32.vlgmr.msra.gmra.mxu1 %v39_v19 }
  0x24   :  { %277 = vmatprep.mubr.f32.mxu0 %v36_v20  ;;  %283 = vmatprep.mubr.f32.mxu1 %v40_v21 }
  0x27   :  { %278 = vmatmul.mubr.f32.gmra.mxu0 %v37_v22  ;;  %284 = vmatmul.mubr.f32.gmra.mxu1 %v41_v23 }
  0xe3   :  { %v276_v25 = vpop.f32.mrf.mxu0  ;;  %v282_v26 = vpop.f32.mrf.mxu1 }
  0xe4   :  { %v198_v27 = vadd.f32 %v276_v25, %v217_v24  ;;  %v202_v28 = vadd.f32 %v282_v26, %v217_v24 }
  0xe5   :  { %v124_v29 = vpop.f32.mrf.mxu0  ;;  %v144_v30 = vpop.f32.mrf.mxu1 }
  0xe6   :  { %206 = vst [vmem:[%s440_s3 + $0x8] sm:$0xff] %v198_v27  ;;  %210 = vst [vmem:[%s440_s3 + $0x28] sm:$0xff] %v202_v28  ;;  %v197_v31 = vadd.f32 %v217_v24, %v124_v29  ;;  %v201_v32 = vadd.f32 %v217_v24, %v144_v30 }
  0xe7   :  { %v279_v33 = vpop.f32.mrf.mxu0  ;;  %v285_v34 = vpop.f32.mrf.mxu1 }
  0xe8   :  { %205 = vst [vmem:[%s440_s3] sm:$0xff] %v197_v31  ;;  %209 = vst [vmem:[%s440_s3 + $0x20] sm:$0xff] %v201_v32  ;;  %v200_v35 = vadd.f32 %v279_v33, %v217_v24  ;;  %v204_v36 = vadd.f32 %v285_v34, %v217_v24 }
  0xe9   :  { %v134_v37 = vpop.f32.mrf.mxu0  ;;  %v154_v38 = vpop.f32.mrf.mxu1 }
  0xea   :  { %208 = vst [vmem:[%s440_s3 + $0x18] sm:$0xff] %v200_v35  ;;  %212 = vst [vmem:[%s440_s3 + $0x38] sm:$0xff] %v204_v36  ;;  %v199_v39 = vadd.f32 %v217_v24, %v134_v37  ;;  %v203_v40 = vadd.f32 %v217_v24, %v154_v38 }
  0xec   :  { %207 = vst [vmem:[%s440_s3 + $0x10] sm:$0xff] %v199_v39  ;;  %211 = vst [vmem:[%s440_s3 + $0x30] sm:$0xff] %v203_v40 }

</bundles_post_ra>
